<compile_context>
chip_gen: v7x
topology: tpu7x:2x2x1
jax: 0.10.0
libtpu: 0.0.40
codegen_flags: <defaults>
</compile_context>

<pallas_src>
import jax
import jax.numpy as jnp
from jax import lax
from jax.experimental import pallas as pl
from jax.experimental.pallas import tpu as pltpu


def mlp_kernel(x_ref, w1_ref, b1_ref, w2_ref, b2_ref, o_ref):
    # x_ref : (in_size, TILE_B)             VMEM, streamed per grid step
    # w1_ref: (hidden, in_size)             VMEM, resident
    # b1_ref: (hidden, 1), w2_ref: (hidden, 1)
    # b2_ref: (1, 1)                        SMEM scalar
    # o_ref : (1, n_chunks, chunk)          VMEM, lane-dense rows
    w1 = w1_ref[...]
    b1 = b1_ref[...]
    w2 = w2_ref[...]
    b2 = b2_ref[0, 0]                       # SMEM scalar read (outside the loop)
    n_chunks = o_ref.shape[1]
    chunk = o_ref.shape[2]

    def body(c, carry):
        start = pl.multiple_of(c * chunk, 128)
        xc = x_ref[:, pl.ds(start, chunk)]                          # (K, C)
        # hidden = relu(W1 @ x + b1): (H, K) @ (K, C) -> (H, C)  (MXU + VPU)
        h = jnp.dot(w1, xc, preferred_element_type=jnp.float32)
        h = jnp.maximum(h + b1, 0.0)                                # (H,1) lane-broadcast
        # layer 2 (out_features == 1): VPU broadcast-mul + XLU sublane reduce.
        z = jnp.sum(h * w2, axis=0, keepdims=True) + b2             # (1, C)
        sig = jax.nn.sigmoid(z).astype(o_ref.dtype)                 # (1, C)
        o_ref[:, pl.ds(c, 1), :] = sig[None]                        # dense vst, row c
        return carry

    lax.fori_loop(0, n_chunks, body, 0)


def _round_up(x, m):
    return ((x + m - 1) // m) * m


def neural_net_forward_feature_major(xt, w1, b1, w2, b2, *,
                                     tile_b=262144, chunk=8192):
    """Forward pass of NeuralNet.

    xt: (input_size, B) float32 -- feature-major activations (batch on lanes).
    w1: (hidden, input_size)    -- PyTorch linear1.weight layout
    b1: (hidden, 1)
    w2: (hidden, 1)             -- PyTorch linear2.weight transposed
    b2: (1, 1)
    returns (B, 1) float32
    """
    in_size, B = xt.shape
    hidden = w1.shape[0]

    # ---- batch tiling (lane axis); everything kept a multiple of 128 --------
    cap = _round_up(B, 128)                       # no point tiling past padded batch
    tile_b = max(128, min(_round_up(tile_b, 128), cap))
    chunk = max(128, min(_round_up(chunk, 128), tile_b))
    tile_b = _round_up(tile_b, chunk)             # tile is a whole number of chunks
    n_tiles = pl.cdiv(B, tile_b)
    if n_tiles > 1:
        # Balance tiles (minimizes tail padding; keeps both v7x cores fed).
        tile_b = max(chunk, _round_up(pl.cdiv(B, n_tiles), chunk))
        n_tiles = pl.cdiv(B, tile_b)
    elif tile_b >= 2 * chunk and (tile_b // chunk) % 2 == 0:
        # One tile would cover the whole batch: split in two at zero extra
        # padding so the "parallel" grid axis feeds both v7x TensorCores.
        tile_b //= 2
        n_tiles = 2
    n_chunks = tile_b // chunk
    Bp = n_tiles * tile_b

    if Bp != B:   # pad only the ragged tail; no-op for nicely shaped batches
        xt = jnp.pad(xt, ((0, 0), (0, Bp - B)))

    # ---- VMEM budget: double-buffered x (sublane-padded to 8 rows),
    #      double-buffered lane-dense output, (hidden, chunk) intermediates ----
    est = (2 * _round_up(in_size, 8) * tile_b * 4
           + 2 * _round_up(n_chunks, 8) * chunk * 4
           + 3 * hidden * chunk * 4
           + 4 * (hidden * in_size + 2 * hidden + 8) * 4)
    vmem_limit = int(min(56 * 1024 * 1024, max(32 * 1024 * 1024, 2 * est)))

    out = pl.pallas_call(
        mlp_kernel,
        out_shape=jax.ShapeDtypeStruct((n_tiles, n_chunks, chunk), jnp.float32),
        grid=(n_tiles,),
        in_specs=[
            pl.BlockSpec((in_size, tile_b), lambda i: (0, i)),      # x streams
            pl.BlockSpec((hidden, in_size), lambda i: (0, 0)),      # weights resident
            pl.BlockSpec((hidden, 1), lambda i: (0, 0)),            # b1
            pl.BlockSpec((hidden, 1), lambda i: (0, 0)),            # w2
            pl.BlockSpec(memory_space=pltpu.MemorySpace.SMEM),      # b2 scalar
        ],
        out_specs=pl.BlockSpec((1, n_chunks, chunk), lambda i: (i, 0, 0)),
        compiler_params=pltpu.CompilerParams(
            dimension_semantics=("parallel",),   # shard batch tiles across TCs (v7x)
            vmem_limit_bytes=vmem_limit,
        ),
    )(xt, w1, b1, w2, b2)

    # (n_tiles, n_chunks, chunk) flattens row-major exactly in batch order.
    return out.reshape(-1)[:B].reshape(B, 1)


def neural_net_forward(x, w1, b1, w2, b2, **kwargs):
    """Convenience wrapper taking PyTorch-style (B, input_size) activations.

    Prefer producing activations feature-major upstream and calling
    neural_net_forward_feature_major directly: the transpose below is an extra
    HBM round-trip on an otherwise memory-bound kernel.
    """
    return neural_net_forward_feature_major(x.T, w1, b1, w2, b2, **kwargs)


if __name__ == "__main__":
    input_size = 4
    hidden_size = 32
    batch = 8

    key = jax.random.PRNGKey(0)
    kx, kw1, kb1, kw2, kb2 = jax.random.split(key, 5)

    # Deterministic parameter init (PyTorch-Linear-like uniform bounds),
    # stored in the layouts the kernel expects.
    bound1 = 1.0 / (input_size ** 0.5)
    bound2 = 1.0 / (hidden_size ** 0.5)
    w1 = jax.random.uniform(kw1, (hidden_size, input_size), jnp.float32, -bound1, bound1)
    b1 = jax.random.uniform(kb1, (hidden_size, 1), jnp.float32, -bound1, bound1)
    w2 = jax.random.uniform(kw2, (hidden_size, 1), jnp.float32, -bound2, bound2)
    b2 = jax.random.uniform(kb2, (1, 1), jnp.float32, -bound2, bound2)

    def reference(xb):
        # sigmoid(relu(x @ W1.T + b1) @ W2 + b2)
        return jax.nn.sigmoid(jnp.maximum(xb @ w1.T + b1[:, 0], 0.0) @ w2 + b2)

    # 1) Module-native small shapes (batch=8, input_size=4), feature-major path.
    x = jax.random.normal(kx, (batch, input_size), jnp.float32)
    out = jax.block_until_ready(neural_net_forward_feature_major(x.T, w1, b1, w2, b2))
    assert out.shape == (batch, 1)
    assert jnp.allclose(out, reference(x), atol=1e-5, rtol=1e-5)

    # 2) Ragged batch + multi-tile grid + padded tail (tiny tile/chunk overrides).
    x2 = jax.random.normal(kx, (300, input_size), jnp.float32)
    out2 = jax.block_until_ready(
        neural_net_forward_feature_major(x2.T, w1, b1, w2, b2, tile_b=256, chunk=128))
    assert out2.shape == (300, 1)
    assert jnp.allclose(out2, reference(x2), atol=1e-5, rtol=1e-5)

    # 3) Multi-chunk inner loop within a single grid step (PyTorch-layout wrapper).
    out3 = jax.block_until_ready(neural_net_forward(x2, w1, b1, w2, b2, chunk=128))
    assert jnp.allclose(out3, reference(x2), atol=1e-5, rtol=1e-5)

    print("KERNEL_OK")
</pallas_src>

<mosaic_0001>
module attributes {stable_mosaic.version = 11 : i64} {
  func.func @mlp_kernel(%arg0: i32, %arg1: memref<4x128xf32, #tpu.memory_space<vmem>>, %arg2: memref<32x4xf32, #tpu.memory_space<vmem>>, %arg3: memref<32x1xf32, #tpu.memory_space<vmem>>, %arg4: memref<32x1xf32, #tpu.memory_space<vmem>>, %arg5: memref<1x1xf32, #tpu.memory_space<smem>>, %arg6: memref<1x1x128xf32, #tpu.memory_space<vmem>>) attributes {dimension_semantics = [#tpu.dimension_semantics<parallel>], iteration_bounds = array<i64: 1>, scalar_prefetch = 0 : i64, scratch_operands = 0 : i64, tpu.core_type = #tpu.core_type<tc>, window_params = [{transform_indices = @transform_0, window_bounds = array<i64: 4, 128>}, {pipeline_mode = #tpu.pipeline_mode<synchronous>, transform_indices = @transform_1, window_bounds = array<i64: 32, 4>}, {pipeline_mode = #tpu.pipeline_mode<synchronous>, transform_indices = @transform_2, window_bounds = array<i64: 32, 1>}, {pipeline_mode = #tpu.pipeline_mode<synchronous>, transform_indices = @transform_3, window_bounds = array<i64: 32, 1>}, {transform_indices = @transform_4, window_bounds = array<i64: 1, 1>}, {transform_indices = @transform_5, window_bounds = array<i64: 1, 1, 128>}]} {
    %c0 = arith.constant 0 : index
    %c0_0 = arith.constant 0 : index
    %0 = vector.load %arg2[%c0, %c0_0] : memref<32x4xf32, #tpu.memory_space<vmem>>, vector<32x4xf32>
    %c0_1 = arith.constant 0 : index
    %c0_2 = arith.constant 0 : index
    %1 = vector.load %arg3[%c0_1, %c0_2] : memref<32x1xf32, #tpu.memory_space<vmem>>, vector<32x1xf32>
    %c0_3 = arith.constant 0 : index
    %c0_4 = arith.constant 0 : index
    %2 = vector.load %arg4[%c0_3, %c0_4] : memref<32x1xf32, #tpu.memory_space<vmem>>, vector<32x1xf32>
    %c0_5 = arith.constant 0 : index
    %c0_6 = arith.constant 0 : index
    %3 = memref.load %arg5[%c0_5, %c0_6] : memref<1x1xf32, #tpu.memory_space<smem>>
    %c0_i32 = arith.constant 0 : i32
    %c128_i32 = arith.constant 128 : i32
    %4 = arith.muli %c0_i32, %c128_i32 : i32
    %5 = tpu.assume_multiple %4, 128 : i32
    %c0_7 = arith.constant 0 : index
    %6 = arith.index_cast %5 : i32 to index
    %7 = vector.load %arg1[%c0_7, %6] : memref<4x128xf32, #tpu.memory_space<vmem>>, vector<4x128xf32>
    %cst = arith.constant dense<0.000000e+00> : vector<32x128xf32>
    %8 = tpu.matmul %0, %7, %cst {dimension_numbers = #tpu.dot_dimension_numbers<[1], [0], [0], [1], [0, 0, 1, 1], [], []>} : vector<32x4xf32>, vector<4x128xf32>, vector<32x128xf32> -> vector<32x128xf32>
    %9 = vector.broadcast %1 : vector<32x1xf32> to vector<32x128xf32>
    %10 = arith.addf %8, %9 : vector<32x128xf32>
    %cst_8 = arith.constant 0.000000e+00 : f32
    %11 = vector.broadcast %cst_8 : f32 to vector<32x128xf32>
    %12 = arith.maximumf %10, %11 : vector<32x128xf32>
    %13 = vector.broadcast %2 : vector<32x1xf32> to vector<32x128xf32>
    %14 = arith.mulf %12, %13 : vector<32x128xf32>
    %cst_9 = arith.constant dense<0.000000e+00> : vector<128xf32>
    %15 = vector.multi_reduction <add>, %14, %cst_9 [0] : vector<32x128xf32> to vector<128xf32>
    %16 = vector.shape_cast %15 : vector<128xf32> to vector<1x128xf32>
    %17 = vector.broadcast %3 : f32 to vector<1x128xf32>
    %18 = arith.addf %16, %17 : vector<1x128xf32>
    %19 = arith.negf %18 : vector<1x128xf32>
    %20 = math.exp %19 : vector<1x128xf32>
    %cst_10 = arith.constant 1.000000e+00 : f32
    %21 = vector.broadcast %cst_10 : f32 to vector<1x128xf32>
    %22 = arith.addf %21, %20 : vector<1x128xf32>
    %23 = arith.divf %21, %22 : vector<1x128xf32>
    %24 = vector.shape_cast %23 : vector<1x128xf32> to vector<1x1x128xf32>
    %c0_11 = arith.constant 0 : index
    %25 = arith.index_cast %c0_i32 : i32 to index
    %c0_12 = arith.constant 0 : index
    %26 = vector.load %arg6[%c0_11, %25, %c0_12] : memref<1x1x128xf32, #tpu.memory_space<vmem>>, vector<1x1x128xf32>
    tpu.vector_store %arg6[%c0_11, %25, %c0_12], %24 {strides = array<i32>} : memref<1x1x128xf32, #tpu.memory_space<vmem>>, vector<1x1x128xf32>,
    %c1_i32 = arith.constant 1 : i32
    return
  }
  func.func @transform_0(%arg0: i32) -> (i32, i32) {
    %c0_i32 = arith.constant 0 : i32
    %c0_i32_0 = arith.constant 0 : i32
    return %c0_i32, %arg0 : i32, i32
  }
  func.func @transform_1(%arg0: i32) -> (i32, i32) {
    %c0_i32 = arith.constant 0 : i32
    %c0_i32_0 = arith.constant 0 : i32
    %c0_i32_1 = arith.constant 0 : i32
    return %c0_i32, %c0_i32_0 : i32, i32
  }
  func.func @transform_2(%arg0: i32) -> (i32, i32) {
    %c0_i32 = arith.constant 0 : i32
    %c0_i32_0 = arith.constant 0 : i32
    %c0_i32_1 = arith.constant 0 : i32
    return %c0_i32, %c0_i32_0 : i32, i32
  }
  func.func @transform_3(%arg0: i32) -> (i32, i32) {
    %c0_i32 = arith.constant 0 : i32
    %c0_i32_0 = arith.constant 0 : i32
    %c0_i32_1 = arith.constant 0 : i32
    return %c0_i32, %c0_i32_0 : i32, i32
  }
  func.func @transform_4(%arg0: i32) -> (i32, i32) {
    %c0_i32 = arith.constant 0 : i32
    %c0_i32_0 = arith.constant 0 : i32
    %c0_i32_1 = arith.constant 0 : i32
    return %c0_i32, %c0_i32_0 : i32, i32
  }
  func.func @transform_5(%arg0: i32) -> (i32, i32, i32) {
    %c0_i32 = arith.constant 0 : i32
    %c0_i32_0 = arith.constant 0 : i32
    %c0_i32_1 = arith.constant 0 : i32
    return %arg0, %c0_i32, %c0_i32_0 : i32, i32, i32
  }
}

</mosaic_0001>

<bundles_post_ra>
// kernel: tpu_custom_call.1
= control target key start
LH: loop header
LB: loop body
LE: loop exit
PB: predicated region body
PF: predicated region fallthrough
CT: control target
= control target key end

     0   :  { %vm69_vm0 = vcmask 1043456   ;;  %vm56_vm1 = vcmask 31744   ;;  %s357_s0 = inlined_call_operand.vmem [shape: f32[4,128], index: 0, kind: input, shape index: {}]   ;;  %s358_s1 = inlined_call_operand.vmem [shape: f32[32,4], index: 1, kind: input, shape index: {}]   ;;  %s359_s2 = inlined_call_operand.vmem [shape: f32[32,1], index: 2, kind: input, shape index: {}]   ;;  %s360_s3 = inlined_call_operand.vmem [shape: f32[32,1], index: 3, kind: input, shape index: {}]   ;;  %s361_s4 = inlined_call_operand.<no memory space> [shape: f32[1,1], index: 4, kind: input, shape index: {}]   ;;  %s362_s5 = inlined_call_operand.hbm [shape: f32[1,1,128], index: 5, kind: output, shape index: {}]  }
   0x1   :  { %v35_v0 = vld [vmem:[%s357_s0] sm:$0xf]  ;;  %v24_v2 = vld [vmem:[%s358_s1 + $0x10] sm:$0xff]  ;;  %v23_v3 = vld [vmem:[%s358_s1 + $0x8] sm:$0xff] }
   0x2   :  { %v22_v1 = vld [vmem:[%s358_s1] sm:$0xff]  ;;  %229 = vmatprep.subr.msk.mxu0 %vm69_vm0, %v35_v0  ;;  %237 = vmatprep.subr.msk.mxu1 %vm69_vm0, %v35_v0  ;;  %v25_v4 = vld [vmem:[%s358_s1 + $0x18] sm:$0xff]  ;;  %v28_v6 = vld [vmem:[%s359_s2 + $0x10] sm:$0xff] }
   0x3   :  { %230 = vmatpush3.msk.msra.mxu0 %vm69_vm0, %v35_v0  ;;  %238 = vmatpush3.msk.msra.mxu1 %vm69_vm0, %v35_v0  ;;  %v26_v5 = vld [vmem:[%s359_s2] sm:$0xff] }
   0x4   :  { %231 = vmatprep.mubr.msk.f32.mxu0 %vm56_vm1, %v22_v1  ;;  %234 = vmatprep.mubr.msk.f32.mxu1 %vm56_vm1, %v24_v2 }
   0x5   :  { %232 = vmatmul.mubr.msk.f32.vlgmr.msra.gmra.mrb[0].mxu0 %vm56_vm1, %v23_v3  ;;  %235 = vmatmul.mubr.msk.f32.vlgmr.msra.gmra.mrb[0].mxu1 %vm56_vm1, %v25_v4 }
   0x6   :  { %11 = vsyncpa [#allocation4], 0  ;;  %v271_v7 = vmov 0   ;;  %v27_v8 = vld [vmem:[%s359_s2 + $0x8] sm:$0xff]  ;;  %v29_v9 = vld [vmem:[%s359_s2 + $0x18] sm:$0xff]  ;;  %v195_v46 = vstv %s361_s4  ;;  %s272_s17 = smov [#allocation3]  }
   0x7   :  { %241 = vset.pattern.permute.xlu0 %v271_v7  ;;  %242 = vset.pattern.permute.xlu1 %v271_v7  ;;  %v30_v10 = vld [vmem:[%s360_s3] sm:$0xff]  ;;  %v31_v11 = vld [vmem:[%s360_s3 + $0x8] sm:$0xff]  ;;  %v32_v12 = vld [vmem:[%s360_s3 + $0x10] sm:$0xff]  ;;  %s210_s18 = sshll.u32 %s272_s17, 4  ;;  %s211_s18 = int_to_ptr.vmem [resolvable:$true] %s210_s18 }
   0x8   :  { %38 = vperm.xlu0 %241, %v26_v5   ;;  %48 = vperm.xlu1 %242, %v28_v6   ;;  %v33_v13 = vld [vmem:[%s360_s3 + $0x18] sm:$0xff]  ;;  %s247_s19 = scalar_lea.vmem %s211_s18, 16  ;;  %s251_s20 = scalar_lea.vmem %s211_s18, 32 }
   0x9   :  { %p248_p0 = scmp.ne.s32.totalorder %s211_s18, %s247_s19  ;;  %p252_p1 = scmp.lt.s32.totalorder %s211_s18, %s211_s18 }
   0xa   :  { %p253_p2 = scmp.lt.s32.totalorder %s251_s20, %s247_s19 }
   0xc   :  { %43 = vperm.xlu0 %241, %v27_v8   ;;  %53 = vperm.xlu1 %242, %v29_v9   ;;  %p254_p3 = por %p253_p2, %p252_p1 }
   0xe   :  { %p255_p4 = pnand %p254_p3, %p248_p0 }
  0x10   :  { %164 = vperm.xlu0 %241, %v30_v10   ;;  %169 = vperm.xlu1 %242, %v31_v11  }
  0x14   :  { %174 = vperm.xlu0 %241, %v32_v12   ;;  %179 = vperm.xlu1 %242, %v33_v13  }
  0x87   :  { %v39_v14 = vpop.permute.xlu0 %38  ;;  %v49_v15 = vpop.permute.xlu1 %48 }
  0x8b   :  { %v44_v16 = vpop.permute.xlu0 %43  ;;  %v54_v17 = vpop.permute.xlu1 %53 }
  0x8f   :  { %v165_v18 = vpop.permute.xlu0 %164  ;;  %v170_v27 = vpop.permute.xlu1 %169 }
  0x93   :  { %v175_v34 = vpop.permute.xlu0 %174  ;;  %v180_v37 = vpop.permute.xlu1 %179 }
  0xd8   :  { %v233_v19 = vpop.f32.mrb[0].mxu0  ;;  %v236_v20 = vpop.f32.mrb[0].mxu1 }
  0xd9   :  { %v145_v21 = vadd.f32 %v233_v19, %v44_v16  ;;  %v139_v22 = vpop.f32.mrb[1].mxu0  ;;  %v149_v23 = vpop.f32.mrb[1].mxu1  ;;  %v155_v24 = vadd.f32 %v236_v20, %v54_v17 }
  0xda   :  { %v140_v25 = vadd.f32 %v139_v22, %v39_v14  ;;  %v150_v26 = vadd.f32 %v149_v23, %v49_v15 }
  0xdb   :  { %v159_v28 = vmax.f32 %v145_v21, 0.0  ;;  %v161_v32 = vmax.f32 %v155_v24, 0.0 }
  0xdc   :  { %v158_v29 = vmax.f32 %v140_v25, 0.0  ;;  %v160_v30 = vmax.f32 %v150_v26, 0.0 }
  0xdd   :  { %v183_v31 = vmul.f32 %v170_v27, %v159_v28  ;;  %v185_v38 = vmul.f32 %v180_v37, %v161_v32 }
  0xde   :  { %v182_v33 = vmul.f32 %v165_v18, %v158_v29  ;;  %v184_v36 = vmul.f32 %v175_v34, %v160_v30 }
  0xe0   :  { %v186_v35 = vadd.f32 %v183_v31, %v182_v33 }
  0xe2   :  { %v187_v39 = vadd.f32 %v186_v35, %v184_v36 }
  0xe4   :  { %v188_v40 = vadd.f32 %v187_v39, %v185_v38 }
  0xe6   :  { %v189_v41 = vrot.slane %v188_v40, 4 }
  0xe8   :  { %v190_v42 = vadd.f32 %v189_v41, %v188_v40 }
  0xea   :  { %v191_v43 = vrot.slane %v190_v42, 2 }
  0xec   :  { %v192_v44 = vadd.f32 %v191_v43, %v190_v42 }
  0xee   :  { %v193_v45 = vrot.slane %v192_v44, 1 }
  0xf0   :  { %v194_v47 = vadd.f32 %v193_v45, %v192_v44 }
  0xf2   :  { %v196_v48 = vadd.f32 %v195_v46, %v194_v47 }
  0xf4   :  { %v223_v49 = vmul.f32 -1.442695, %v196_v48 }
  0xf6   :  { %243 = vpow2.f32 %v223_v49 }
 0x100   :  { %v244_v50 = vpop.eup %243 }
 0x101   :  { %v200_v51 = vadd.f32 1.0, %v244_v50 }
 0x103   :  { %245 = vrcp.f32 %v200_v51 }
 0x10d   :  { %v246_v52 = vpop.eup %245 }
 0x10e   :  { %203 = vst [vmem:[#allocation3] sm:$0x1] %v246_v52 }
 0x10f   :  { %258 = shalt.err (!%p255_p4)
}
 0x110   :  { %s259_s22 = scalar_lea.hbm %s362_s5, 16 }
 0x111   :  { %p260_p5 = scmp.ne.s32.totalorder %s362_s5, %s259_s22  ;;  %p263_p6 = scmp.lt.u32.totalorder %s259_s22, %s362_s5 }
 0x113   :  { %p265_p7 = pnand %p263_p6, %p260_p5 }
 0x115   :  { %268 = shalt.err (!%p265_p7)
}
 0x116   :  { %213 = dma.vmem_to_hbm [thread:$0]  %s211_s18, 16, %s362_s5, [#allocation4]  }
 0x117   :  { %269 = dma.done.wait [#allocation4], 16  }
 0x118   :  { %270 = vsyncadd [#allocation4], 4294967280 }
 0x119   :  { %217 = vsyncpa [#allocation4], 1 }

</bundles_post_ra>
